<compile_context>
chip_gen: v5e
topology: v5e:2x2
jax: 0.10.0
libtpu: 0.0.40
codegen_flags: <defaults>
</compile_context>

<pallas_src>
import jax
import jax.numpy as jnp
from jax import lax
from jax.experimental import pallas as pl
from jax.experimental.pallas import tpu as pltpu


def _round_up(n, m):
    return ((n + m - 1) // m) * m


def tuning_head_kernel(x_ref, w1_ref, b1_ref, w2d_ref, b2d_ref, o_ref):
    # x: (tm, 512) f32|bf16, w1: (512, 128) bf16, b1: (1, 128) f32,
    # w2d: (1, 128) f32 (= w2[:,1]-w2[:,0]), b2d: (1, 1) f32 in SMEM,
    # o: (tm, 2) f32.
    x = x_ref[...].astype(jnp.bfloat16)   # no-op if the producer already emits bf16

    # Linear(512 -> 128) on the MXU, bf16 operands, f32 accumulation; + ReLU.
    h = jnp.dot(x, w1_ref[...], preferred_element_type=jnp.float32) + b1_ref[...]
    h = jnp.maximum(h, 0.0)

    # Dropout() -> identity at inference time.

    # Linear(128 -> 2) + Softmax(dim=1) collapsed to a single-column sigmoid:
    #   softmax([l0, l1])[1] = sigmoid(l1 - l0)
    # Computed on VPU (broadcast multiply) + one XLU cross-lane reduce.
    d = jnp.sum(h * w2d_ref[...], axis=-1, keepdims=True) + b2d_ref[0, 0]  # (tm, 1)
    p1 = 1.0 / (1.0 + jnp.exp(-d))
    p0 = 1.0 - p1

    # True 2-wide output: col 0 = p0, col 1 = p1.
    col = lax.broadcasted_iota(jnp.int32, o_ref.shape, 1)
    o_ref[...] = jnp.where(col == 0, p0, p1)


def tuning_head(x, w1, b1, w2, b2, *, tm=None):
    """x: (B, 512) f32 (or bf16) embedding; weights in (in, out) layout.

    Returns (B, 2) f32 class probabilities.
    """
    B = x.shape[0]

    # Weight preprocessing (tiny, one XLA op each): bf16 w1 halves weight DMA;
    # (w2, b2) collapsed to the logit-difference column used by the sigmoid form.
    w1_bf = w1.astype(jnp.bfloat16)
    b1r = b1.reshape(1, 128).astype(jnp.float32)
    w2d = (w2[:, 1] - w2[:, 0]).reshape(1, 128).astype(jnp.float32)
    b2f = b2.reshape(-1)
    b2d = (b2f[1] - b2f[0]).reshape(1, 1).astype(jnp.float32)

    # Batch tile: up to 1024 rows per tile (mem-bound roofline); if the whole
    # batch would fit in a single tile, split it in two so the "parallel" axis
    # actually shards across both v7x TensorCores.
    if tm is None:
        n_tiles = pl.cdiv(B, 1024)
        if n_tiles == 1 and B > 8:
            n_tiles = 2
        tm = _round_up(pl.cdiv(B, n_tiles), 8)

    # No full-copy jnp.pad for ragged batches: the grid uses cdiv and Pallas
    # masks the trailing partial block (OOB tail rows read unspecified values;
    # all math is row-wise and their stores are discarded).  Only when the
    # batch is smaller than one 8-row-aligned tile do we pad (a few rows).
    if B < tm:
        x = jnp.pad(x, ((0, tm - B), (0, 0)))
        b_eff = tm
    else:
        b_eff = B

    out = pl.pallas_call(
        tuning_head_kernel,
        out_shape=jax.ShapeDtypeStruct((b_eff, 2), jnp.float32),
        grid=(pl.cdiv(b_eff, tm),),
        in_specs=[
            pl.BlockSpec((tm, 512), lambda i: (i, 0)),           # x: revolving batch tile
            pl.BlockSpec((512, 128), lambda i: (0, 0)),          # w1: resident
            pl.BlockSpec((1, 128), lambda i: (0, 0)),            # b1: resident
            pl.BlockSpec((1, 128), lambda i: (0, 0)),            # w2 diff col: resident
            pl.BlockSpec(memory_space=pltpu.MemorySpace.SMEM),   # b2 diff: SMEM scalar
        ],
        out_specs=pl.BlockSpec((tm, 2), lambda i: (i, 0)),
        compiler_params=pltpu.CompilerParams(
            dimension_semantics=("parallel",)),                  # megacore on v7x
    )(x, w1_bf, b1r, w2d, b2d)

    return out if b_eff == B else out[:B]


def init_params(key):
    """Deterministic init mimicking PyTorch nn.Linear default (U[-1/sqrt(fan_in), +])."""
    k1, k2, k3, k4 = jax.random.split(key, 4)
    lim1 = 1.0 / jnp.sqrt(512.0)
    lim2 = 1.0 / jnp.sqrt(128.0)
    w1 = jax.random.uniform(k1, (512, 128), jnp.float32, -lim1, lim1)
    b1 = jax.random.uniform(k2, (1, 128), jnp.float32, -lim1, lim1)
    w2 = jax.random.uniform(k3, (128, 2), jnp.float32, -lim2, lim2)
    b2 = jax.random.uniform(k4, (1, 2), jnp.float32, -lim2, lim2)
    return w1, b1, w2, b2


def reference_f32(x, w1, b1, w2, b2):
    h = jnp.maximum(x @ w1 + b1, 0.0)
    return jax.nn.softmax(h @ w2 + b2, axis=1)


def reference_bf16(x, w1, b1, w2, b2):
    # Matches the kernel's bf16-operand / f32-accumulate first GEMM.
    h = jnp.dot(x.astype(jnp.bfloat16), w1.astype(jnp.bfloat16),
                preferred_element_type=jnp.float32) + b1
    h = jnp.maximum(h, 0.0)
    return jax.nn.softmax(h @ w2 + b2, axis=1)


if __name__ == "__main__":
    key = jax.random.PRNGKey(0)
    kx, kp, kx2 = jax.random.split(key, 3)
    w1, b1, w2, b2 = init_params(kp)

    # Small batch (per-request path): single 8-row tile, grid=(1,).
    B = 8
    x = jax.random.normal(kx, (B, 512), jnp.float32)
    out = jax.block_until_ready(tuning_head(x, w1, b1, w2, b2))
    assert out.shape == (B, 2)
    assert jnp.allclose(out, reference_bf16(x, w1, b1, w2, b2), atol=1e-4, rtol=1e-4)
    assert jnp.allclose(out, reference_f32(x, w1, b1, w2, b2), atol=5e-2, rtol=5e-2)
    assert jnp.allclose(jnp.sum(out, axis=1), 1.0, atol=1e-5)

    # Larger, non-multiple batch: two-tile grid (tm=152) with a masked trailing
    # partial block and no wrapper-side padding copy.
    B2 = 300
    x2 = jax.random.normal(kx2, (B2, 512), jnp.float32)
    out2 = jax.block_until_ready(tuning_head(x2, w1, b1, w2, b2))
    assert out2.shape == (B2, 2)
    assert jnp.allclose(out2, reference_bf16(x2, w1, b1, w2, b2), atol=1e-4, rtol=1e-4)
    assert jnp.allclose(jnp.sum(out2, axis=1), 1.0, atol=1e-5)

    print("KERNEL_OK")
</pallas_src>

<mosaic_0001>
module attributes {stable_mosaic.version = 11 : i64} {
  func.func @tuning_head_kernel(%arg0: i32, %arg1: memref<8x512xf32, #tpu.memory_space<vmem>>, %arg2: memref<512x128xbf16, #tpu.memory_space<vmem>>, %arg3: memref<1x128xf32, #tpu.memory_space<vmem>>, %arg4: memref<1x128xf32, #tpu.memory_space<vmem>>, %arg5: memref<1x1xf32, #tpu.memory_space<smem>>, %arg6: memref<8x2xf32, #tpu.memory_space<vmem>>) attributes {dimension_semantics = [#tpu.dimension_semantics<parallel>], iteration_bounds = array<i64: 1>, scalar_prefetch = 0 : i64, scratch_operands = 0 : i64, tpu.core_type = #tpu.core_type<tc>, window_params = [{transform_indices = @transform_0, window_bounds = array<i64: 8, 512>}, {pipeline_mode = #tpu.pipeline_mode<synchronous>, transform_indices = @transform_1, window_bounds = array<i64: 512, 128>}, {pipeline_mode = #tpu.pipeline_mode<synchronous>, transform_indices = @transform_2, window_bounds = array<i64: 1, 128>}, {pipeline_mode = #tpu.pipeline_mode<synchronous>, transform_indices = @transform_3, window_bounds = array<i64: 1, 128>}, {transform_indices = @transform_4, window_bounds = array<i64: 1, 1>}, {transform_indices = @transform_5, window_bounds = array<i64: 8, 2>}]} {
    %c0 = arith.constant 0 : index
    %c0_0 = arith.constant 0 : index
    %0 = vector.load %arg1[%c0, %c0_0] : memref<8x512xf32, #tpu.memory_space<vmem>>, vector<8x512xf32>
    %1 = arith.truncf %0 : vector<8x512xf32> to vector<8x512xbf16>
    %c0_1 = arith.constant 0 : index
    %c0_2 = arith.constant 0 : index
    %2 = vector.load %arg2[%c0_1, %c0_2] : memref<512x128xbf16, #tpu.memory_space<vmem>>, vector<512x128xbf16>
    %cst = arith.constant dense<0.000000e+00> : vector<8x128xf32>
    %3 = tpu.matmul %1, %2, %cst {dimension_numbers = #tpu.dot_dimension_numbers<[1], [0], [0], [1], [0, 0, 1, 1], [], []>} : vector<8x512xbf16>, vector<512x128xbf16>, vector<8x128xf32> -> vector<8x128xf32>
    %c0_3 = arith.constant 0 : index
    %c0_4 = arith.constant 0 : index
    %4 = vector.load %arg3[%c0_3, %c0_4] : memref<1x128xf32, #tpu.memory_space<vmem>>, vector<1x128xf32>
    %5 = vector.broadcast %4 : vector<1x128xf32> to vector<8x128xf32>
    %6 = arith.addf %3, %5 : vector<8x128xf32>
    %cst_5 = arith.constant 0.000000e+00 : f32
    %7 = vector.broadcast %cst_5 : f32 to vector<8x128xf32>
    %8 = arith.maximumf %6, %7 : vector<8x128xf32>
    %c0_6 = arith.constant 0 : index
    %c0_7 = arith.constant 0 : index
    %9 = vector.load %arg4[%c0_6, %c0_7] : memref<1x128xf32, #tpu.memory_space<vmem>>, vector<1x128xf32>
    %10 = vector.broadcast %9 : vector<1x128xf32> to vector<8x128xf32>
    %11 = arith.mulf %8, %10 : vector<8x128xf32>
    %cst_8 = arith.constant dense<0.000000e+00> : vector<8xf32>
    %12 = vector.multi_reduction <add>, %11, %cst_8 [1] : vector<8x128xf32> to vector<8xf32>
    %13 = vector.shape_cast %12 : vector<8xf32> to vector<8x1xf32>
    %c0_9 = arith.constant 0 : index
    %c0_10 = arith.constant 0 : index
    %14 = memref.load %arg5[%c0_9, %c0_10] : memref<1x1xf32, #tpu.memory_space<smem>>
    %15 = vector.broadcast %14 : f32 to vector<8x1xf32>
    %16 = arith.addf %13, %15 : vector<8x1xf32>
    %cst_11 = arith.constant 0.000000e+00 : f32
    %17 = vector.broadcast %cst_11 : f32 to vector<8x1xf32>
    %18 = arith.subf %17, %16 : vector<8x1xf32>
    %19 = math.exp %18 : vector<8x1xf32>
    %cst_12 = arith.constant 1.000000e+00 : f32
    %20 = vector.broadcast %cst_12 : f32 to vector<8x1xf32>
    %21 = arith.addf %20, %19 : vector<8x1xf32>
    %cst_13 = arith.constant 1.000000e+00 : f32
    %22 = vector.broadcast %cst_13 : f32 to vector<8x1xf32>
    %23 = arith.divf %22, %21 : vector<8x1xf32>
    %cst_14 = arith.constant 1.000000e+00 : f32
    %24 = vector.broadcast %cst_14 : f32 to vector<8x1xf32>
    %25 = arith.subf %24, %23 : vector<8x1xf32>
    %26 = tpu.iota {dimensions = array<i32: 1>} : vector<8x2xi32>
    %c0_i32 = arith.constant 0 : i32
    %27 = vector.broadcast %c0_i32 : i32 to vector<8x2xi32>
    %28 = arith.cmpi eq, %26, %27 : vector<8x2xi32>
    %29 = vector.shape_cast %25 : vector<8x1xf32> to vector<8x1xf32>
    %30 = vector.broadcast %29 : vector<8x1xf32> to vector<8x2xf32>
    %31 = vector.shape_cast %23 : vector<8x1xf32> to vector<8x1xf32>
    %32 = vector.broadcast %31 : vector<8x1xf32> to vector<8x2xf32>
    %33 = arith.select %28, %30, %32 : vector<8x2xi1>, vector<8x2xf32>
    %c0_15 = arith.constant 0 : index
    %c0_16 = arith.constant 0 : index
    %34 = vector.load %arg6[%c0_15, %c0_16] : memref<8x2xf32, #tpu.memory_space<vmem>>, vector<8x2xf32>
    tpu.vector_store %arg6[%c0_15, %c0_16], %33 {strides = array<i32>} : memref<8x2xf32, #tpu.memory_space<vmem>>, vector<8x2xf32>,
    return
  }
  func.func @transform_0(%arg0: i32) -> (i32, i32) {
    %c0_i32 = arith.constant 0 : i32
    %c0_i32_0 = arith.constant 0 : i32
    return %arg0, %c0_i32 : i32, i32
  }
  func.func @transform_1(%arg0: i32) -> (i32, i32) {
    %c0_i32 = arith.constant 0 : i32
    %c0_i32_0 = arith.constant 0 : i32
    %c0_i32_1 = arith.constant 0 : i32
    return %c0_i32, %c0_i32_0 : i32, i32
  }
  func.func @transform_2(%arg0: i32) -> (i32, i32) {
    %c0_i32 = arith.constant 0 : i32
    %c0_i32_0 = arith.constant 0 : i32
    %c0_i32_1 = arith.constant 0 : i32
    return %c0_i32, %c0_i32_0 : i32, i32
  }
  func.func @transform_3(%arg0: i32) -> (i32, i32) {
    %c0_i32 = arith.constant 0 : i32
    %c0_i32_0 = arith.constant 0 : i32
    %c0_i32_1 = arith.constant 0 : i32
    return %c0_i32, %c0_i32_0 : i32, i32
  }
  func.func @transform_4(%arg0: i32) -> (i32, i32) {
    %c0_i32 = arith.constant 0 : i32
    %c0_i32_0 = arith.constant 0 : i32
    %c0_i32_1 = arith.constant 0 : i32
    return %c0_i32, %c0_i32_0 : i32, i32
  }
  func.func @transform_5(%arg0: i32) -> (i32, i32) {
    %c0_i32 = arith.constant 0 : i32
    %c0_i32_0 = arith.constant 0 : i32
    return %arg0, %c0_i32 : i32, i32
  }
}

</mosaic_0001>

<bundles_post_ra>
// kernel: tpu_custom_call.1
= control target key start
LH: loop header
LB: loop body
LE: loop exit
PB: predicated region body
PF: predicated region fallthrough
CT: control target
= control target key end

     0   :  { %11 = vsyncpa [#allocation4], 0  ;;  %s688_s0 = inlined_call_operand.hbm [shape: f32[8,512], index: 0, kind: input, shape index: {}]   ;;  %s689_s1 = inlined_call_operand.hbm [shape: bf16[512,128], index: 1, kind: input, shape index: {}]   ;;  %s690_s2 = inlined_call_operand.vmem [shape: f32[1,128], index: 2, kind: input, shape index: {}]   ;;  %s691_s3 = inlined_call_operand.vmem [shape: f32[1,128], index: 3, kind: input, shape index: {}]   ;;  %s692_s4 = inlined_call_operand.<no memory space> [shape: f32[1,1], index: 4, kind: input, shape index: {}]   ;;  %s693_s5 = inlined_call_operand.vmem [shape: f32[8,2], index: 5, kind: output, shape index: {}]  }
   0x1   :  { %s18_s20 = sshll.u32 %s688_s0, 4  ;;  %s19_s20 = int_to_ptr.hbm [resolvable:$true] %s18_s20 }
   0x2   :  { %12 = vsyncpa [#allocation6], 0  ;;  %s636_s21 = smov [#allocation3]   ;;  %s28_s25 = sshll.u32 %s689_s1, 4  ;;  %s29_s25 = int_to_ptr.hbm [resolvable:$true] %s28_s25 }
   0x3   :  { %s20_s22 = sshll.u32 %s636_s21, 4  ;;  %s637_s26 = smov [#allocation5]   ;;  %s21_s22 = int_to_ptr.vmem [resolvable:$true] %s20_s22 }
   0x4   :  { %23 = dma.hbm_to_vmem [thread:$0]  %s19_s20, 512, %s21_s22, [#allocation4]  }
   0x5   :  { %s30_s27 = sshll.u32 %s637_s26, 4  ;;  %s638_s28 = smov 64   ;;  %s31_s27 = int_to_ptr.vmem [resolvable:$true] %s30_s27 }
   0x6   :  { %s639_s29 = smov 4  }
   0x7   :  { %36 = dma.hbm_to_vmem [thread:$0]  %s29_s25, 4096, %s31_s27, [#allocation6], %s638_s28, %s638_s28, %s639_s29  }
   0x8   :  { %632 = dma.done.wait [#allocation4], 512  }
   0x9   :  { %633 = vsyncadd [#allocation4], 4294966784 }
   0xa   :  { %634 = dma.done.wait [#allocation6], 4096  }
   0xb   :  { %635 = vsyncadd [#allocation6], 4294963200  ;;  %v549_v0 = vld [vmem:[#allocation5 + $0x38] sm:$0xff]  ;;  %v548_v4 = vld [vmem:[#allocation5 + $0x30] sm:$0xff]  ;;  %v380_v56 = vstv %s692_s4  ;;  %vm406_vm5 = vcmask 15360  }
   0xc   :  { %v557_v1 = vld [vmem:[#allocation5 + $0x78] sm:$0xff]  ;;  %319 = vmatpush.bf16.msra.mxu0 %v549_v0  ;;  %v556_v5 = vld [vmem:[#allocation5 + $0x70] sm:$0xff]  ;;  %v547_v8 = vld [vmem:[#allocation5 + $0x28] sm:$0xff] }
   0xd   :  { %v565_v2 = vld [vmem:[#allocation5 + $0xb8] sm:$0xff]  ;;  %332 = vmatpush.bf16.msra.mxu1 %v557_v1  ;;  %v564_v6 = vld [vmem:[#allocation5 + $0xb0] sm:$0xff]  ;;  %v555_v9 = vld [vmem:[#allocation5 + $0x68] sm:$0xff]  ;;  %v402_v1 = vlaneseq }
   0xe   :  { %v573_v3 = vld [vmem:[#allocation5 + $0xf8] sm:$0xff]  ;;  %345 = vmatpush.bf16.msra.mxu2 %v565_v2  ;;  %v572_v7 = vld [vmem:[#allocation5 + $0xf0] sm:$0xff]  ;;  %v563_v10 = vld [vmem:[#allocation5 + $0xa8] sm:$0xff] }
   0xf   :  { %358 = vmatpush.bf16.msra.mxu3 %v573_v3  ;;  %v571_v11 = vld [vmem:[#allocation5 + $0xe8] sm:$0xff]  ;;  %v546_v12 = vld [vmem:[#allocation5 + $0x20] sm:$0xff]  ;;  %v545_v16 = vld [vmem:[#allocation5 + $0x18] sm:$0xff] }
  0x10   :  { %320 = vmatpush.bf16.msra.mxu0 %v548_v4  ;;  %v554_v13 = vld [vmem:[#allocation5 + $0x60] sm:$0xff]  ;;  %v553_v17 = vld [vmem:[#allocation5 + $0x58] sm:$0xff]  ;;  %v544_v20 = vld [vmem:[#allocation5 + $0x10] sm:$0xff] }
  0x11   :  { %333 = vmatpush.bf16.msra.mxu1 %v556_v5  ;;  %v562_v14 = vld [vmem:[#allocation5 + $0xa0] sm:$0xff]  ;;  %v561_v18 = vld [vmem:[#allocation5 + $0x98] sm:$0xff]  ;;  %v552_v21 = vld [vmem:[#allocation5 + $0x50] sm:$0xff] }
  0x12   :  { %346 = vmatpush.bf16.msra.mxu2 %v564_v6  ;;  %v570_v15 = vld [vmem:[#allocation5 + $0xe0] sm:$0xff]  ;;  %v569_v19 = vld [vmem:[#allocation5 + $0xd8] sm:$0xff]  ;;  %v560_v22 = vld [vmem:[#allocation5 + $0x90] sm:$0xff]  ;;  %v403_v6 = vand.u32 127, %v402_v1 }
  0x13   :  { %359 = vmatpush.bf16.msra.mxu3 %v572_v7  ;;  %v568_v23 = vld [vmem:[#allocation5 + $0xd0] sm:$0xff]  ;;  %v543_v24 = vld [vmem:[#allocation5 + $0x8] sm:$0xff]  ;;  %v542_v28 = vld [vmem:[#allocation5] sm:$0xff] }
  0x14   :  { %321 = vmatpush.bf16.msra.mxu0 %v547_v8  ;;  %v551_v25 = vld [vmem:[#allocation5 + $0x48] sm:$0xff]  ;;  %v550_v29 = vld [vmem:[#allocation5 + $0x40] sm:$0xff]  ;;  %v53_v34 = vld [vmem:[#allocation3 + $0x10] sm:$0xff]  ;;  %vm404_vm4 = vcmp.eq.s32.totalorder %v403_v6, 0 }
  0x15   :  { %334 = vmatpush.bf16.msra.mxu1 %v555_v9  ;;  %v559_v26 = vld [vmem:[#allocation5 + $0x88] sm:$0xff]  ;;  %v558_v30 = vld [vmem:[#allocation5 + $0x80] sm:$0xff]  ;;  %v54_v35 = vld [vmem:[#allocation3 + $0x18] sm:$0xff]  ;;  %v57_v38 = vpack.c.bf16 %v53_v34, %v53_v34 }
  0x16   :  { %347 = vmatpush.bf16.msra.mxu2 %v563_v10  ;;  %v567_v27 = vld [vmem:[#allocation5 + $0xc8] sm:$0xff]  ;;  %v51_v31 = vld [vmem:[#allocation3] sm:$0xff]  ;;  %v58_v39 = vpack.c.bf16 %v54_v35, %v54_v35 }
  0x17   :  { %360 = vmatpush.bf16.msra.mxu3 %v571_v11  ;;  %v52_v32 = vld [vmem:[#allocation3 + $0x8] sm:$0xff]  ;;  %v566_v33 = vld [vmem:[#allocation5 + $0xc0] sm:$0xff]  ;;  %v55_v36 = vpack.c.bf16 %v51_v31, %v51_v31 }
  0x18   :  { %322 = vmatpush.bf16.msra.mxu0 %v546_v12  ;;  %v56_v37 = vpack.c.bf16 %v52_v32, %v52_v32  ;;  %v578_v40 = vld [vmem:[%s690_s2] ss:$0 sm:$0xff] }
  0x19   :  { %335 = vmatpush.bf16.msra.mxu1 %v554_v13  ;;  %v579_v51 = vld [vmem:[%s691_s3] ss:$0 sm:$0xff] }
  0x1a   :  { %348 = vmatpush.bf16.msra.mxu2 %v562_v14 }
  0x1b   :  { %361 = vmatpush.bf16.msra.mxu3 %v570_v15 }
  0x1c   :  { %323 = vmatpush.bf16.msra.mxu0 %v545_v16 }
  0x1d   :  { %336 = vmatpush.bf16.msra.mxu1 %v553_v17 }
  0x1e   :  { %349 = vmatpush.bf16.msra.mxu2 %v561_v18 }
  0x1f   :  { %362 = vmatpush.bf16.msra.mxu3 %v569_v19 }
  0x20   :  { %324 = vmatpush.bf16.msra.mxu0 %v544_v20 }
  0x21   :  { %337 = vmatpush.bf16.msra.mxu1 %v552_v21 }
  0x22   :  { %350 = vmatpush.bf16.msra.mxu2 %v560_v22 }
  0x23   :  { %363 = vmatpush.bf16.msra.mxu3 %v568_v23 }
  0x24   :  { %325 = vmatpush.bf16.msra.mxu0 %v543_v24 }
  0x25   :  { %338 = vmatpush.bf16.msra.mxu1 %v551_v25 }
  0x26   :  { %351 = vmatpush.bf16.msra.mxu2 %v559_v26 }
  0x27   :  { %364 = vmatpush.bf16.msra.mxu3 %v567_v27 }
  0x28   :  { %326 = vmatpush.bf16.msra.mxu0 %v542_v28 }
  0x29   :  { %339 = vmatpush.bf16.msra.mxu1 %v550_v29 }
  0x2a   :  { %352 = vmatpush.bf16.msra.mxu2 %v558_v30 }
  0x2b   :  { %365 = vmatpush.bf16.msra.mxu3 %v566_v33  ;;  %327 = vmatmul.bf16.vlgmr.msra.gmra.mxu0 %v55_v36 }
  0x2c   :  { %340 = vmatmul.bf16.vlgmr.msra.gmra.mxu1 %v56_v37 }
  0x2d   :  { %353 = vmatmul.bf16.vlgmr.msra.gmra.mxu2 %v57_v38 }
  0x2e   :  { %366 = vmatmul.bf16.vlgmr.msra.gmra.mxu3 %v58_v39 }
  0xa8   :  { %v328_v41 = vpop.f32.mrf.mxu0 }
  0xa9   :  { %v341_v42 = vpop.f32.mrf.mxu1  ;;  %v329_v43 = vadd.f32 %v578_v40, %v328_v41 }
  0xab   :  { %v342_v44 = vadd.f32 %v341_v42, %v329_v43 }
  0xb0   :  { %v354_v45 = vpop.f32.mrf.mxu2  ;;  %v330_v48 = vpop.f32.mrf.mxu0 }
  0xb1   :  { %v367_v46 = vpop.f32.mrf.mxu3  ;;  %v355_v47 = vadd.f32 %v354_v45, %v342_v44  ;;  %v343_v49 = vpop.f32.mrf.mxu1 }
  0xb3   :  { %v368_v50 = vadd.f32 %v367_v46, %v355_v47 }
  0xb5   :  { %v371_v52 = vmax.f32 %v368_v50, 0.0 }
  0xb7   :  { %v376_v53 = vmul.f32 %v579_v51, %v371_v52 }
  0xb8   :  { %v356_v54 = vpop.f32.mrf.mxu2 }
  0xb9   :  { %v369_v55 = vpop.f32.mrf.mxu3  ;;  %377 = vadd.xlane.f32.xlu0 %v376_v53 }
 0x12c   :  { %v378_v57 = vpop.xlane.xlu0 %377 }
 0x12d   :  { %v381_v58 = vadd.f32 %v380_v56, %v378_v57 }
 0x12f   :  { %v382_v59 = vsub.f32 0.0, %v381_v58 }
 0x131   :  { %v383_v60 = vmul.f32 1.442695, %v382_v59 }
 0x133   :  { %580 = vpow2.f32 %v383_v60 }
 0x139   :  { %v581_v61 = vpop.eup %580 }
 0x13a   :  { %v385_v62 = vadd.f32 1.0, %v581_v61 }
 0x13c   :  { %582 = vrcp.f32 %v385_v62  ;;  %v397_v3 = vand.u32 2147483648, %v385_v62  ;;  %v395_v5 = vand.u32 2147483647, %v385_v62  ;;  %vm391_vm1 = vweird.f32 %v385_v62 }
 0x13e   :  { %v398_v8 = vor.u32 1.1754944e-38, %v397_v3  ;;  %vm396_vm3 = vcmp.eq.f32.partialorder %v395_v5, 8.507059e+37 }
 0x142   :  { %v583_v63 = vpop.eup %582 }
 0x143   :  { %v387_v0 = vmul.f32 %v583_v63, %v385_v62  ;;  %vm392_vm0 = vweird.f32 %v583_v63 }
 0x144   :  { %vm393_vm2 = vmor %vm391_vm1, %vm392_vm0 }
 0x145   :  { %v388_v2 = vsub.f32 1.0, %v387_v0 }
 0x147   :  { %v389_v4 = vmul.f32 %v583_v63, %v388_v2 }
 0x149   :  { %v390_v7 = vadd.f32 %v583_v63, %v389_v4 }
 0x14b   :  { %v394_v9 = vsel %vm393_vm2, %v583_v63, %v390_v7 }
 0x14c   :  { %v399_v10 = vsel %vm396_vm3, %v398_v8, %v394_v9 }
 0x14d   :  { %v401_v11 = vsub.f32 1.0, %v399_v10 }
 0x14f   :  { %v405_v12 = vsel %vm404_vm4, %v401_v11, %v399_v10 }
 0x150   :  { %407 = vst.msk [vmem:[%s693_s5] sm:$0xff] %vm406_vm5, %v405_v12 }
 0x151   :  { %412 = vsyncpa [#allocation4], 1 }
 0x152   :  { %413 = vsyncpa [#allocation6], 1 }

</bundles_post_ra>
